<compile_context>
chip_gen: v7x
topology: tpu7x:2x2x1
jax: 0.10.0
libtpu: 0.0.40
codegen_flags: <defaults>
</compile_context>

<pallas_src>
import jax
import jax.numpy as jnp
from jax.experimental import pallas as pl
from jax.experimental.pallas import tpu as pltpu


# ----------------------------- activation -----------------------------------
def _erf(x):
    # Abramowitz & Stegun 7.1.26 rational approximation, |err| <= 1.5e-7.
    # exp() runs on the EUP (a separate, otherwise idle bundle slot); the rest
    # is a short VPU polynomial.  Kept hand-rolled for guaranteed Mosaic
    # lowering on all target generations.
    # TODO(synk): switch to jax.lax.erf if/when its Mosaic lowering is
    # confirmed everywhere (removes the 1.5e-7 approximation error).
    a1, a2, a3, a4, a5 = (0.254829592, -0.284496736, 1.421413741,
                          -1.453152027, 1.061405429)
    p = 0.3275911
    s = jnp.where(x >= 0.0, 1.0, -1.0)
    z = jnp.abs(x)
    t = 1.0 / (1.0 + p * z)
    poly = t * (a1 + t * (a2 + t * (a3 + t * (a4 + t * a5))))
    return s * (1.0 - poly * jnp.exp(-z * z))


def _gelu_exact(x):
    # Matches torch.nn.GELU() (erf-based, non-approximate).
    return 0.5 * x * (1.0 + _erf(x * 0.7071067811865476))


# ------------------------------- kernel --------------------------------------
def _mlp_kernel(x_ref, w1_ref, b1_ref, w2_ref, b2_ref, o_ref, acc_ref):
    # Grid = (M blocks [parallel], HID chunks [arbitrary, last]).
    # x_ref : (TILE_M, C_in)        row tile (constant across k)
    # w1_ref: (C_in, HID_TILE)      fc1 weight chunk, (K, N) layout
    # b1_ref: (1, HID_TILE)
    # w2_ref: (HID_TILE, C_out)     fc2 weight chunk, (K, N) layout
    # b2_ref: (1, C_out)            constant, single-buffered
    # o_ref : (TILE_M, C_out)       resident across k (written at k==last)
    # acc_ref: (TILE_M, C_out) f32  VMEM scratch accumulator
    k = pl.program_id(1)

    @pl.when(k == 0)
    def _():
        acc_ref[...] = jnp.zeros_like(acc_ref)

    # fc1 chunk (MXU, f32 accumulate) + bias + exact GELU, all in VMEM/vregs.
    x = x_ref[...].astype(w1_ref.dtype)           # mixed-dtype safety
    h = jnp.dot(x, w1_ref[...], preferred_element_type=jnp.float32)
    h = h + b1_ref[...].astype(jnp.float32)
    h = _gelu_exact(h)

    # Dropout is identity in eval mode -- nothing to do.

    # fc2 chunk: accumulate this hidden chunk's contribution (f32).
    h = h.astype(w2_ref.dtype)                    # feed MXU in weight dtype
    acc_ref[...] += jnp.dot(h, w2_ref[...], preferred_element_type=jnp.float32)

    @pl.when(k == pl.num_programs(1) - 1)
    def _():
        y = acc_ref[...] + b2_ref[...].astype(jnp.float32)
        o_ref[...] = y.astype(o_ref.dtype)


# ------------------------------ wrapper ---------------------------------------
def _round_up(x, m):
    return (x + m - 1) // m * m


def _pick_hid_tile(hid, target):
    """Largest multiple of 128 that divides `hid` and is <= target (else hid)."""
    if hid <= target:
        return hid
    c = (target // 128) * 128
    while c >= 128:
        if hid % c == 0:
            return c
        c -= 128
    return hid  # no clean MXU-aligned divisor -> keep whole hidden dim


def _itemsize(dt):
    return jnp.dtype(dt).itemsize


def _estimate_vmem_bytes(tm, c_in, kt, c_out, x_dt, w_dt, out_dt):
    b = 0
    b += 2 * tm * c_in * _itemsize(x_dt)      # x tile (double-buffered)
    b += 2 * c_in * kt * _itemsize(w_dt)      # w1 chunk
    b += 2 * kt * _itemsize(w_dt)             # b1 chunk
    b += 2 * kt * c_out * _itemsize(w_dt)     # w2 chunk
    b += 1 * c_out * _itemsize(w_dt)          # b2 (single-buffered)
    b += 2 * tm * c_out * _itemsize(out_dt)   # out tile
    b += tm * c_out * 4                       # f32 accumulator scratch
    return b


def mlp_forward(x, w1, b1, w2, b2, *, tile_m=512, hid_tile=512, interpret=False):
    """Fused Mlp forward: gelu(x @ w1.T + b1) @ w2.T + b2.

    Args:
      x : (..., C_in)
      w1: (HID, C_in)   fc1.weight (PyTorch layout)
      b1: (HID,)        fc1.bias
      w2: (C_out, HID)  fc2.weight (PyTorch layout)
      b2: (C_out,)      fc2.bias
    Returns:
      (..., C_out)
    """
    *lead, c_in = x.shape
    hid, c_in_w = w1.shape
    c_out, hid_w = w2.shape
    assert c_in == c_in_w and hid == hid_w

    m = 1
    for d in lead:
        m *= d
    x2 = x.reshape(m, c_in)

    # One-time (K, N) layout for the weights: standard MXU contraction, no
    # per-grid-step relayout in the kernel.
    w1t = w1.T                      # (C_in, HID)
    w2t = w2.T                      # (HID, C_out)
    b1_2d = b1.reshape(1, hid)
    b2_2d = b2.reshape(1, c_out)

    # Row tile: large, 8-aligned (128/256-multiples at scale via the default).
    tm = min(tile_m, _round_up(m, 8))
    # Hidden chunk: multiple of 128 that divides HID (exactness of reduction).
    kt = _pick_hid_tile(hid, hid_tile)
    assert hid % kt == 0

    grid = (pl.cdiv(m, tm), hid // kt)

    # Explicit VMEM budget only when the working set might exceed the default
    # scoped limit; cap against physical VMEM (64 MiB v7x, 128 MiB v5e/v6e).
    est = _estimate_vmem_bytes(tm, c_in, kt, c_out, x2.dtype, w1t.dtype, x.dtype)
    vmem_limit = None
    if est > 12 * 1024 * 1024:
        try:
            phys = pltpu.get_tpu_info().vmem_capacity_bytes
        except Exception:
            phys = 64 * 1024 * 1024  # conservative (v7x)
        vmem_limit = min(int(2 * est), int(0.85 * phys))

    cp_kwargs = dict(dimension_semantics=("parallel", "arbitrary"))
    if vmem_limit is not None:
        cp_kwargs["vmem_limit_bytes"] = vmem_limit

    cost = pl.CostEstimate(
        flops=2 * m * (c_in * hid + hid * c_out),
        transcendentals=m * hid,
        bytes_accessed=(x2.size * _itemsize(x2.dtype)
                        + (w1t.size + w2t.size + b1.size + b2.size)
                        * _itemsize(w1t.dtype)
                        + m * c_out * _itemsize(x.dtype)),
    )

    out = pl.pallas_call(
        _mlp_kernel,
        out_shape=jax.ShapeDtypeStruct((m, c_out), x.dtype),
        grid=grid,
        in_specs=[
            pl.BlockSpec((tm, c_in), lambda i, k: (i, 0)),    # x row tile
            pl.BlockSpec((c_in, kt), lambda i, k: (0, k)),    # w1 chunk
            pl.BlockSpec((1, kt), lambda i, k: (0, k)),       # b1 chunk
            pl.BlockSpec((kt, c_out), lambda i, k: (k, 0)),   # w2 chunk
            pl.BlockSpec((1, c_out), lambda i, k: (0, 0),     # b2 (constant)
                         pipeline_mode=pl.Buffered(1)),
        ],
        out_specs=pl.BlockSpec((tm, c_out), lambda i, k: (i, 0)),
        scratch_shapes=[pltpu.VMEM((tm, c_out), jnp.float32)],
        compiler_params=pltpu.CompilerParams(**cp_kwargs),
        cost_estimate=cost,
        interpret=interpret,
    )(x2, w1t, b1_2d, w2t, b2_2d)

    return out.reshape(*lead, c_out)


# ---------------------------------------------------------------------------
# Pure-JAX reference (mirrors the PyTorch forward, eval mode)
# ---------------------------------------------------------------------------
def mlp_reference(x, w1, b1, w2, b2):
    h = jax.nn.gelu(x @ w1.T + b1, approximate=False)
    return h @ w2.T + b2


if __name__ == "__main__":
    # Small shapes consistent with the module: tokens (B=2, N=8), in=32,
    # hidden=256, out=32.  hid_tile=128 exercises the 2-step hidden reduction.
    B, N, C_IN, HID, C_OUT = 2, 8, 32, 256, 32

    key = jax.random.PRNGKey(0)
    kx, kw1, kb1, kw2, kb2 = jax.random.split(key, 5)

    x = jax.random.normal(kx, (B, N, C_IN), dtype=jnp.float32)
    # PyTorch nn.Linear weight layout: (out_features, in_features)
    w1 = jax.random.normal(kw1, (HID, C_IN), dtype=jnp.float32) * 0.05
    b1 = jax.random.normal(kb1, (HID,), dtype=jnp.float32) * 0.05
    w2 = jax.random.normal(kw2, (C_OUT, HID), dtype=jnp.float32) * 0.05
    b2 = jax.random.normal(kb2, (C_OUT,), dtype=jnp.float32) * 0.05

    out = mlp_forward(x, w1, b1, w2, b2, hid_tile=128)
    out = jax.block_until_ready(out)

    ref = mlp_reference(x, w1, b1, w2, b2)
    assert out.shape == (B, N, C_OUT)
    assert jnp.allclose(out, ref, atol=1e-4, rtol=1e-4), float(
        jnp.max(jnp.abs(out - ref)))

    print("KERNEL_OK")
</pallas_src>

<mosaic_0001>
module attributes {stable_mosaic.version = 11 : i64} {
  func.func @_mlp_kernel(%arg0: i32, %arg1: i32, %arg2: memref<16x32xf32, #tpu.memory_space<vmem>>, %arg3: memref<32x128xf32, #tpu.memory_space<vmem>>, %arg4: memref<1x128xf32, #tpu.memory_space<vmem>>, %arg5: memref<128x32xf32, #tpu.memory_space<vmem>>, %arg6: memref<1x32xf32, #tpu.memory_space<vmem>>, %arg7: memref<16x32xf32, #tpu.memory_space<vmem>>, %arg8: memref<16x32xf32, #tpu.memory_space<vmem>>) attributes {dimension_semantics = [#tpu.dimension_semantics<parallel>, #tpu.dimension_semantics<arbitrary>], iteration_bounds = array<i64: 1, 2>, scalar_prefetch = 0 : i64, scratch_operands = 1 : i64, tpu.core_type = #tpu.core_type<tc>, window_params = [{transform_indices = @transform_0, window_bounds = array<i64: 16, 32>}, {transform_indices = @transform_1, window_bounds = array<i64: 32, 128>}, {transform_indices = @transform_2, window_bounds = array<i64: 1, 128>}, {transform_indices = @transform_3, window_bounds = array<i64: 128, 32>}, {pipeline_mode = #tpu.pipeline_mode<synchronous>, transform_indices = @transform_4, window_bounds = array<i64: 1, 32>}, {transform_indices = @transform_5, window_bounds = array<i64: 16, 32>}]} {
    %c0_i32 = arith.constant 0 : i32
    %0 = arith.cmpi eq, %arg1, %c0_i32 : i32
    %1 = arith.extui %0 : i1 to i32
    %c0_i32_0 = arith.constant 0 : i32
    %2 = arith.cmpi ne, %1, %c0_i32_0 : i32
    scf.if %2 {
      %cst_30 = arith.constant 0.000000e+00 : f32
      %58 = vector.broadcast %cst_30 : f32 to vector<16x32xf32>
      %c0_31 = arith.constant 0 : index
      %c0_32 = arith.constant 0 : index
      %59 = vector.load %arg8[%c0_31, %c0_32] : memref<16x32xf32, #tpu.memory_space<vmem>>, vector<16x32xf32>
      tpu.vector_store %arg8[%c0_31, %c0_32], %58 {strides = array<i32>} : memref<16x32xf32, #tpu.memory_space<vmem>>, vector<16x32xf32>,
    } else {
    }
    %c0 = arith.constant 0 : index
    %c0_1 = arith.constant 0 : index
    %3 = vector.load %arg2[%c0, %c0_1] : memref<16x32xf32, #tpu.memory_space<vmem>>, vector<16x32xf32>
    %c0_2 = arith.constant 0 : index
    %c0_3 = arith.constant 0 : index
    %4 = vector.load %arg3[%c0_2, %c0_3] : memref<32x128xf32, #tpu.memory_space<vmem>>, vector<32x128xf32>
    %cst = arith.constant dense<0.000000e+00> : vector<16x128xf32>
    %5 = tpu.matmul %3, %4, %cst {dimension_numbers = #tpu.dot_dimension_numbers<[1], [0], [0], [1], [0, 0, 1, 1], [], []>} : vector<16x32xf32>, vector<32x128xf32>, vector<16x128xf32> -> vector<16x128xf32>
    %c0_4 = arith.constant 0 : index
    %c0_5 = arith.constant 0 : index
    %6 = vector.load %arg4[%c0_4, %c0_5] : memref<1x128xf32, #tpu.memory_space<vmem>>, vector<1x128xf32>
    %7 = vector.broadcast %6 : vector<1x128xf32> to vector<16x128xf32>
    %8 = arith.addf %5, %7 : vector<16x128xf32>
    %cst_6 = arith.constant 5.000000e-01 : f32
    %9 = vector.broadcast %cst_6 : f32 to vector<16x128xf32>
    %10 = arith.mulf %9, %8 : vector<16x128xf32>
    %cst_7 = arith.constant 0.707106769 : f32
    %11 = vector.broadcast %cst_7 : f32 to vector<16x128xf32>
    %12 = arith.mulf %8, %11 : vector<16x128xf32>
    %cst_8 = arith.constant 0.000000e+00 : f32
    %13 = vector.broadcast %cst_8 : f32 to vector<16x128xf32>
    %14 = arith.cmpf oge, %12, %13 : vector<16x128xf32>
    %cst_9 = arith.constant 1.000000e+00 : f32
    %cst_10 = arith.constant -1.000000e+00 : f32
    %15 = vector.broadcast %cst_9 : f32 to vector<16x128xf32>
    %16 = vector.broadcast %cst_10 : f32 to vector<16x128xf32>
    %17 = arith.select %14, %15, %16 : vector<16x128xi1>, vector<16x128xf32>
    %18 = math.absf %12 : vector<16x128xf32>
    %cst_11 = arith.constant 0.327591091 : f32
    %19 = vector.broadcast %cst_11 : f32 to vector<16x128xf32>
    %20 = arith.mulf %19, %18 : vector<16x128xf32>
    %cst_12 = arith.constant 1.000000e+00 : f32
    %21 = vector.broadcast %cst_12 : f32 to vector<16x128xf32>
    %22 = arith.addf %21, %20 : vector<16x128xf32>
    %cst_13 = arith.constant 1.000000e+00 : f32
    %23 = vector.broadcast %cst_13 : f32 to vector<16x128xf32>
    %24 = arith.divf %23, %22 : vector<16x128xf32>
    %cst_14 = arith.constant 1.06140542 : f32
    %25 = vector.broadcast %cst_14 : f32 to vector<16x128xf32>
    %26 = arith.mulf %24, %25 : vector<16x128xf32>
    %cst_15 = arith.constant -1.45315206 : f32
    %27 = vector.broadcast %cst_15 : f32 to vector<16x128xf32>
    %28 = arith.addf %27, %26 : vector<16x128xf32>
    %29 = arith.mulf %24, %28 : vector<16x128xf32>
    %cst_16 = arith.constant 1.42141378 : f32
    %30 = vector.broadcast %cst_16 : f32 to vector<16x128xf32>
    %31 = arith.addf %30, %29 : vector<16x128xf32>
    %32 = arith.mulf %24, %31 : vector<16x128xf32>
    %cst_17 = arith.constant -0.284496725 : f32
    %33 = vector.broadcast %cst_17 : f32 to vector<16x128xf32>
    %34 = arith.addf %33, %32 : vector<16x128xf32>
    %35 = arith.mulf %24, %34 : vector<16x128xf32>
    %cst_18 = arith.constant 0.254829586 : f32
    %36 = vector.broadcast %cst_18 : f32 to vector<16x128xf32>
    %37 = arith.addf %36, %35 : vector<16x128xf32>
    %38 = arith.mulf %24, %37 : vector<16x128xf32>
    %cst_19 = arith.constant 0.000000e+00 : f32
    %39 = vector.broadcast %cst_19 : f32 to vector<16x128xf32>
    %40 = arith.subf %39, %18 : vector<16x128xf32>
    %41 = arith.mulf %40, %18 : vector<16x128xf32>
    %42 = math.exp %41 : vector<16x128xf32>
    %43 = arith.mulf %38, %42 : vector<16x128xf32>
    %cst_20 = arith.constant 1.000000e+00 : f32
    %44 = vector.broadcast %cst_20 : f32 to vector<16x128xf32>
    %45 = arith.subf %44, %43 : vector<16x128xf32>
    %46 = arith.mulf %17, %45 : vector<16x128xf32>
    %cst_21 = arith.constant 1.000000e+00 : f32
    %47 = vector.broadcast %cst_21 : f32 to vector<16x128xf32>
    %48 = arith.addf %47, %46 : vector<16x128xf32>
    %49 = arith.mulf %10, %48 : vector<16x128xf32>
    %c0_22 = arith.constant 0 : index
    %c0_23 = arith.constant 0 : index
    %50 = vector.load %arg8[%c0_22, %c0_23] : memref<16x32xf32, #tpu.memory_space<vmem>>, vector<16x32xf32>
    %c0_24 = arith.constant 0 : index
    %c0_25 = arith.constant 0 : index
    %51 = vector.load %arg5[%c0_24, %c0_25] : memref<128x32xf32, #tpu.memory_space<vmem>>, vector<128x32xf32>
    %cst_26 = arith.constant dense<0.000000e+00> : vector<16x32xf32>
    %52 = tpu.matmul %49, %51, %cst_26 {dimension_numbers = #tpu.dot_dimension_numbers<[1], [0], [0], [1], [0, 0, 1, 1], [], []>} : vector<16x128xf32>, vector<128x32xf32>, vector<16x32xf32> -> vector<16x32xf32>
    %53 = arith.addf %50, %52 : vector<16x32xf32>
    %c0_27 = arith.constant 0 : index
    %c0_28 = arith.constant 0 : index
    %54 = vector.load %arg8[%c0_27, %c0_28] : memref<16x32xf32, #tpu.memory_space<vmem>>, vector<16x32xf32>
    tpu.vector_store %arg8[%c0_27, %c0_28], %53 {strides = array<i32>} : memref<16x32xf32, #tpu.memory_space<vmem>>, vector<16x32xf32>,
    %c1_i32 = arith.constant 1 : i32
    %55 = arith.cmpi eq, %arg1, %c1_i32 : i32
    %56 = arith.extui %55 : i1 to i32
    %c0_i32_29 = arith.constant 0 : i32
    %57 = arith.cmpi ne, %56, %c0_i32_29 : i32
    scf.if %57 {
      %c0_30 = arith.constant 0 : index
      %c0_31 = arith.constant 0 : index
      %58 = vector.load %arg8[%c0_30, %c0_31] : memref<16x32xf32, #tpu.memory_space<vmem>>, vector<16x32xf32>
      %c0_32 = arith.constant 0 : index
      %c0_33 = arith.constant 0 : index
      %59 = vector.load %arg6[%c0_32, %c0_33] : memref<1x32xf32, #tpu.memory_space<vmem>>, vector<1x32xf32>
      %60 = vector.broadcast %59 : vector<1x32xf32> to vector<16x32xf32>
      %61 = arith.addf %58, %60 : vector<16x32xf32>
      %c0_34 = arith.constant 0 : index
      %c0_35 = arith.constant 0 : index
      %62 = vector.load %arg7[%c0_34, %c0_35] : memref<16x32xf32, #tpu.memory_space<vmem>>, vector<16x32xf32>
      tpu.vector_store %arg7[%c0_34, %c0_35], %61 {strides = array<i32>} : memref<16x32xf32, #tpu.memory_space<vmem>>, vector<16x32xf32>,
    } else {
    }
    return
  }
  func.func @transform_0(%arg0: i32, %arg1: i32) -> (i32, i32) {
    %c0_i32 = arith.constant 0 : i32
    %c0_i32_0 = arith.constant 0 : i32
    return %arg0, %c0_i32 : i32, i32
  }
  func.func @transform_1(%arg0: i32, %arg1: i32) -> (i32, i32) {
    %c0_i32 = arith.constant 0 : i32
    %c0_i32_0 = arith.constant 0 : i32
    return %c0_i32, %arg1 : i32, i32
  }
  func.func @transform_2(%arg0: i32, %arg1: i32) -> (i32, i32) {
    %c0_i32 = arith.constant 0 : i32
    %c0_i32_0 = arith.constant 0 : i32
    return %c0_i32, %arg1 : i32, i32
  }
  func.func @transform_3(%arg0: i32, %arg1: i32) -> (i32, i32) {
    %c0_i32 = arith.constant 0 : i32
    %c0_i32_0 = arith.constant 0 : i32
    return %arg1, %c0_i32 : i32, i32
  }
  func.func @transform_4(%arg0: i32, %arg1: i32) -> (i32, i32) {
    %c0_i32 = arith.constant 0 : i32
    %c0_i32_0 = arith.constant 0 : i32
    %c0_i32_1 = arith.constant 0 : i32
    return %c0_i32, %c0_i32_0 : i32, i32
  }
  func.func @transform_5(%arg0: i32, %arg1: i32) -> (i32, i32) {
    %c0_i32 = arith.constant 0 : i32
    %c0_i32_0 = arith.constant 0 : i32
    return %arg0, %c0_i32 : i32, i32
  }
}

</mosaic_0001>

<bundles_post_ra>
// kernel: tpu_custom_call.1
= control target key start
LH: loop header
LB: loop body
LE: loop exit
PB: predicated region body
PF: predicated region fallthrough
CT: control target
= control target key end

     0   :  { %10 = vsyncpa [#allocation5], 0  ;;  %s1001_s18 = smov 0   ;;  %s1003_s19 = smov 0   ;;  %s1143_s0 = inlined_call_operand.vmem [shape: f32[16,32], index: 0, kind: input, shape index: {}]   ;;  %s1144_s1 = inlined_call_operand.vmem [shape: f32[32,256], index: 1, kind: input, shape index: {}]   ;;  %s1145_s2 = inlined_call_operand.vmem [shape: f32[1,256], index: 2, kind: input, shape index: {}]   ;;  %s1146_s3 = inlined_call_operand.vmem [shape: f32[256,32], index: 3, kind: input, shape index: {}]   ;;  %s1147_s4 = inlined_call_operand.vmem [shape: f32[1,32], index: 4, kind: input, shape index: {}]   ;;  %s1148_s5 = inlined_call_operand.hbm [shape: f32[16,32], index: 5, kind: output, shape index: {}]  }
   0x1   :  { %s1005_s20 = smov 0   ;;  %s1007_s21 = smov 0  }
   0x2   :  { %s1009_s22 = smov 0  }
   0x3 LB: > { %s707_s23 = sadd.s32 4294967295, %s964_s22   ;;  %s25_s24 = sadd.s32 1, %s960_s21  ;;  %s964_s22 = sphi %s1009_s22, %s16_s22   ;;  %s960_s21 = sphi %s1007_s21, %s1153_s21   ;;  %s956_s20 = sphi %s1005_s20, %s1152_s20   ;;  %s952_s19 = sphi %s1003_s19, %s1151_s19   ;;  %s948_s18 = sphi %s1001_s18, %s1150_s18  }
   0x4   : > { %p26_p0 = scmp.ge.s32.totalorder %s25_s24, 2  ;;  %p68_p1 = scmp.ne.s32.totalorder %s952_s19, %s948_s18 }
   0x5   : > { %p69_p2 = scmp.eq.s32.totalorder %s964_s22, 0  ;;  %s61_s26 = sadd.s32 1, %s952_s19 }
   0x6   : > { %s1155_s24 = smov (%p26_p0, %s25_s24), 0  ;;  %p710_p5 = scmp.ge.s32.totalorder %s964_s22, 2 }
   0x7   : > { %p70_p3 = por %p69_p2, %p68_p1  ;;  %s58_s25 = ssub.s32 %s960_s21, %s1155_s24 }
   0x8   : > { %p59_p4 = scmp.eq.s32.totalorder %s58_s25, 0  ;;  %205 = sbr.rel (%p710_p5) target bundleno = 22 (0x16), region = 24 }
   0xa   : > { %s1037_s27 = scalar_select %p59_p4, %s952_s19, %s61_s26  }
   0xf   : > { %208 = sbr.rel (!%p70_p3) target bundleno = 22 (0x16), region = 28  ;;  %s210_s28 = sand.u32 (%p70_p3), 1, %s952_s19  }
  0x10   : > { %s712_s29 = sshll.u32 (%p70_p3), %s960_s21, 3  ;;  %s711_s30 = sshll.u32 (%p70_p3), %s210_s28, 5 }
  0x11   : > { %s214_s8 = scalar_lea.vmem (%p70_p3), %s1144_s1, %s712_s29  ;;  %s212_s9 = scalar_lea.vmem (%p70_p3), [#allocation3], %s711_s30 }
  0x12   : > { %v248_v0 = vld [vmem:[%s214_s8] sm:$0xff] (%p70_p3)  ;;  %v250_v1 = vld [vmem:[%s214_s8 + $0x10] sm:$0xff] (%p70_p3) }
  0x13   : > { %v252_v2 = vld [vmem:[%s214_s8 + $0x20] sm:$0xff] (%p70_p3)  ;;  %249 = vst [vmem:[%s212_s9] sm:$0xff] (%p70_p3), %v248_v0  ;;  %251 = vst [vmem:[%s212_s9 + $0x8] sm:$0xff] (%p70_p3), %v250_v1  ;;  %v254_v3 = vld [vmem:[%s214_s8 + $0x30] sm:$0xff] (%p70_p3) }
  0x14   : > { %253 = vst [vmem:[%s212_s9 + $0x10] sm:$0xff] (%p70_p3), %v252_v2  ;;  %255 = vst [vmem:[%s212_s9 + $0x18] sm:$0xff] (%p70_p3), %v254_v3 }
  0x16 PF: > { %p713_p6 = scmp.ge.s32.totalorder %s964_s22, 1  ;;  %p275_p7 = scmp.lt.s32.totalorder %s964_s22, 3 }
  0x18   : > { %p276_p8 = pnand %p713_p6, %p275_p7 }
  0x19   : > { %s282_s10 = sand.u32 (!%p276_p8), 1, %s948_s18   ;;  %p323_p9 = scmp.lt.s32.totalorder (!%p276_p8), %s956_s20, 1 }
  0x1a   : > { %279 = sbr.rel (%p276_p8) target bundleno = 567 (0x237), region = 74  ;;  %s714_s11 = sshll.u32 (!%p276_p8), %s282_s10, 5 }
  0x1b   : > { %s715_s12 = sshll.u32 (!%p276_p8), %s956_s20, 4  ;;  %s284_s29 = scalar_lea.vmem (!%p276_p8), [#allocation3], %s714_s11 }
  0x1c   : > { %p327_p10 = scmp.lt.s32.totalorder (!%p276_p8), %s715_s12, 31  ;;  %p717_p11 = scmp.ne.s32.totalorder (!%p276_p8), %s956_s20, 0 }
  0x21   : > { %s1051_s13 = scalar_select %p323_p9, %s956_s20, 1 }
  0x22   : > { %s1157_s12 = smov (!%p327_p10, %s715_s12), 31  ;;  %336 = sbr.rel (%p717_p11) target bundleno = 41 (0x29), region = 82 }
  0x23   : > { %s325_s16 = scalar_lea.vmem %s1145_s2, %s1051_s13  ;;  %s716_s17 = sshll.u32 %s1157_s12, 3  ;;  %vm337_vm0 = vcmask (!%p717_p11), 261120   ;;  %v966_v4 = vmov (!%p717_p11), 0.0  }
  0x24   : > { %s1060_s28 = scalar_lea.vmem %s1146_s3, %s716_s17  ;;  %338 = vst.msk [vmem:[#allocation2] sm:$0xff] (!%p717_p11), %vm337_vm0, %v966_v4  ;;  %339 = vst.msk [vmem:[#allocation2 + $0x8] sm:$0xff] (!%p717_p11), %vm337_vm0, %v966_v4 }
  0x29 PF: > { %v342_v5 = vld [vmem:[%s284_s29] sm:$0xff]  ;;  %v343_v6 = vld [vmem:[%s284_s29 + $0x8] sm:$0xff]  ;;  %v344_v7 = vld [vmem:[%s284_s29 + $0x10] sm:$0xff]  ;;  %vm353_vm1 = vcmask 261120   ;;  %p721_p12 = scmp.ne.s32.totalorder %s956_s20, 1 }
  0x2a   : > { %v797_v8 = vpack.c.bf16 %v343_v6, %v342_v5  ;;  %v345_v9 = vld [vmem:[%s284_s29 + $0x18] sm:$0xff]  ;;  %v340_v10 = vld [vmem:[%s1143_s0] sm:$0xff]  ;;  %v493_v15 = vld [vmem:[%s1060_s28 + $0x10] sm:$0xff] }
  0x2b   : > { %v801_v11 = vpack.c.bf16 %v345_v9, %v344_v7  ;;  %759 = vmatprep.mubr.msk.f32.mxu0 %vm353_vm1, %v340_v10  ;;  %v341_v12 = vld [vmem:[%s1143_s0 + $0x8] sm:$0xff]  ;;  %v491_v13 = vld [vmem:[%s1060_s28] sm:$0xff]  ;;  %v494_v17 = vld [vmem:[%s1060_s28 + $0x18] sm:$0xff] }
  0x2c   : > { %798 = vmatprep.subr.bf16.mxu0 %v797_v8  ;;  %v492_v14 = vld [vmem:[%s1060_s28 + $0x8] sm:$0xff]  ;;  %v809_v18 = vpack.c.bf16 %v494_v17, %v493_v15  ;;  %v495_v19 = vld [vmem:[%s1060_s28 + $0x20] sm:$0xff]  ;;  %v497_v22 = vld [vmem:[%s1060_s28 + $0x30] sm:$0xff]  ;;  %v967_v17 = vmov -1.0  }
  0x2d   : > { %800 = vmatpush3.bf16.msra.mxu0 %v797_v8  ;;  %v805_v16 = vpack.c.bf16 %v492_v14, %v491_v13  ;;  %v496_v20 = vld [vmem:[%s1060_s28 + $0x28] sm:$0xff]  ;;  %v498_v23 = vld [vmem:[%s1060_s28 + $0x38] sm:$0xff]  ;;  %v499_v25 = vld [vmem:[%s1060_s28 + $0x40] sm:$0xff] }
  0x2e   : > { %802 = vmatprep.subr.bf16.mxu0 %v801_v11  ;;  %v813_v21 = vpack.c.bf16 %v496_v20, %v495_v19  ;;  %v817_v24 = vpack.c.bf16 %v498_v23, %v497_v22  ;;  %v500_v26 = vld [vmem:[%s1060_s28 + $0x48] sm:$0xff]  ;;  %v501_v28 = vld [vmem:[%s1060_s28 + $0x50] sm:$0xff]  ;;  %v502_v29 = vld [vmem:[%s1060_s28 + $0x58] sm:$0xff] }
  0x2f   : > { %806 = vmatprep.subr.bf16.mxu1 %v805_v16  ;;  %v821_v27 = vpack.c.bf16 %v500_v26, %v499_v25  ;;  %v825_v30 = vpack.c.bf16 %v502_v29, %v501_v28  ;;  %v503_v31 = vld [vmem:[%s1060_s28 + $0x60] sm:$0xff]  ;;  %v504_v32 = vld [vmem:[%s1060_s28 + $0x68] sm:$0xff]  ;;  %v505_v34 = vld [vmem:[%s1060_s28 + $0x70] sm:$0xff] }
  0x30   : > { %808 = vmatpush3.bf16.msra.mxu1 %v805_v16  ;;  %v829_v33 = vpack.c.bf16 %v504_v32, %v503_v31  ;;  %v506_v35 = vld [vmem:[%s1060_s28 + $0x78] sm:$0xff]  ;;  %v718_v37 = vld [vmem:[%s325_s16] ss:$0 sm:$0xff]  ;;  %v490_v29 = vld [vmem:[#allocation2 + $0x8] sm:$0xff] }
  0x31   : > { %804 = vmatpush3.bf16.msra.mxu0 %v801_v11  ;;  %810 = vmatprep.subr.bf16.mxu1 %v809_v18  ;;  %v833_v36 = vpack.c.bf16 %v506_v35, %v505_v34 }
  0x34   : > { %760 = vmatmul.mubr.msk.f32.vlgmr.msra.gmra.mrb[0].mxu0 %vm353_vm1, %v341_v12  ;;  %812 = vmatpush3.bf16.msra.mxu1 %v809_v18 }
  0x35   : > { %814 = vmatprep.subr.bf16.mxu1 %v813_v21 }
  0x38   : > { %816 = vmatpush3.bf16.msra.mxu1 %v813_v21 }
  0x39   : > { %818 = vmatprep.subr.bf16.mxu1 %v817_v24 }
  0x3c   : > { %820 = vmatpush3.bf16.msra.mxu1 %v817_v24 }
  0x3d   : > { %822 = vmatprep.subr.bf16.mxu1 %v821_v27 }
  0x40   : > { %824 = vmatpush3.bf16.msra.mxu1 %v821_v27 }
  0x41   : > { %826 = vmatprep.subr.bf16.mxu1 %v825_v30 }
  0x44   : > { %828 = vmatpush3.bf16.msra.mxu1 %v825_v30  ;;  %v489_v30 = vld [vmem:[#allocation2] sm:$0xff] }
  0x45   : > { %830 = vmatprep.subr.bf16.mxu1 %v829_v33 }
  0x48   : > { %832 = vmatpush3.bf16.msra.mxu1 %v829_v33 }
  0x49   : > { %834 = vmatprep.subr.bf16.mxu1 %v833_v36 }
  0x4c   : > { %836 = vmatpush3.bf16.msra.mxu1 %v833_v36  ;;  %v722_v36 = vld [vmem:[%s1147_s4] ss:$0 sm:$0xff] (!%p721_p12) }
 0x107   : > { %v761_v38 = vpop.f32.mrb[0].mxu0 }
 0x108   : > { %v432_v39 = vadd.f32 %v761_v38, %v718_v37  ;;  %v426_v40 = vpop.f32.mrb[1].mxu0 }
 0x109   : > { %v427_v41 = vadd.f32 %v718_v37, %v426_v40 }
 0x10a   : > { %v438_v42 = vmul.f32 0.70710677, %v432_v39  ;;  %v436_v26 = vmul.f32 0.5, %v432_v39 }
 0x10b   : > { %v437_v43 = vmul.f32 0.70710677, %v427_v41  ;;  %v435_v24 = vmul.f32 0.5, %v427_v41 }
 0x10c   : > { %v444_v44 = vand.u32 2147483647, %v438_v42  ;;  %vm440_vm2 = vcmp.ge.f32.partialorder %v438_v42, 0.0 }
 0x10d   : > { %v443_v45 = vand.u32 2147483647, %v437_v43  ;;  %vm439_vm3 = vcmp.ge.f32.partialorder %v437_v43, 0.0  ;;  %v442_v18 = vsel %vm440_vm2, 1.0, %v967_v17 }
 0x10e   : > { %v446_v46 = vmul.f32 0.3275911, %v444_v44  ;;  %v472_v50 = vsub.f32 0.0, %v444_v44  ;;  %v441_v20 = vsel %vm439_vm3, 1.0, %v967_v17 }
 0x10f   : > { %v445_v47 = vmul.f32 0.3275911, %v443_v45  ;;  %v471_v51 = vsub.f32 0.0, %v443_v45 }
 0x110   : > { %v448_v48 = vadd.f32 1.0, %v446_v46  ;;  %v474_v53 = vmul.f32 %v472_v50, %v444_v44 }
 0x111   : > { %v447_v49 = vadd.f32 1.0, %v445_v47  ;;  %v473_v55 = vmul.f32 %v471_v51, %v443_v45 }
 0x112   : > { %888 = vrcp.f32 %v448_v48  ;;  %v477_v59 = vmul.f32 1.442695, %v474_v53 }
 0x113   : > { %890 = vrcp.f32 %v447_v49  ;;  %v475_v61 = vmul.f32 1.442695, %v473_v55 }
 0x114   : > { %892 = vpow2.f32 %v477_v59 }
 0x115   : > { %894 = vpow2.f32 %v475_v61 }
 0x11c   : > { %v889_v52 = vpop.eup %888 }
 0x11d   : > { %v891_v54 = vpop.eup %890  ;;  %v454_v56 = vmul.f32 1.0614054, %v889_v52 }
 0x11e   : > { %v453_v57 = vmul.f32 1.0614054, %v891_v54  ;;  %v893_v11 = vpop.eup %892 }
 0x11f   : > { %v456_v58 = vadd.f32 -1.4531521, %v454_v56  ;;  %v895_v13 = vpop.eup %894 }
 0x120   : > { %v455_v60 = vadd.f32 -1.4531521, %v453_v57 }
 0x121   : > { %v458_v62 = vmul.f32 %v889_v52, %v456_v58 }
 0x122   : > { %v457_v63 = vmul.f32 %v891_v54, %v455_v60 }
 0x123   : > { %v460_v0 = vadd.f32 1.4214138, %v458_v62 }
 0x124   : > { %v459_v1 = vadd.f32 1.4214138, %v457_v63 }
 0x125   : > { %v462_v2 = vmul.f32 %v889_v52, %v460_v0 }
 0x126   : > { %v461_v3 = vmul.f32 %v891_v54, %v459_v1 }
 0x127   : > { %v464_v4 = vadd.f32 -0.28449672, %v462_v2 }
 0x128   : > { %v463_v5 = vadd.f32 -0.28449672, %v461_v3 }
 0x129   : > { %v466_v6 = vmul.f32 %v889_v52, %v464_v4 }
 0x12a   : > { %v465_v7 = vmul.f32 %v891_v54, %v463_v5 }
 0x12b   : > { %v468_v8 = vadd.f32 0.2548296, %v466_v6 }
 0x12c   : > { %v467_v9 = vadd.f32 0.2548296, %v465_v7 }
 0x12d   : > { %v470_v10 = vmul.f32 %v889_v52, %v468_v8 }
 0x12e   : > { %v469_v12 = vmul.f32 %v891_v54, %v467_v9 }
 0x12f   : > { %v480_v14 = vmul.f32 %v893_v11, %v470_v10 }
 0x130   : > { %v479_v15 = vmul.f32 %v895_v13, %v469_v12 }
 0x131   : > { %v482_v16 = vsub.f32 1.0, %v480_v14 }
 0x132   : > { %v481_v19 = vsub.f32 1.0, %v479_v15 }
 0x133   : > { %v484_v21 = vmul.f32 %v482_v16, %v442_v18 }
 0x134   : > { %v483_v22 = vmul.f32 %v481_v19, %v441_v20 }
 0x135   : > { %v486_v23 = vadd.f32 1.0, %v484_v21 }
 0x136   : > { %v485_v25 = vadd.f32 1.0, %v483_v22 }
 0x137   : > { %v488_v28 = vmul.f32 %v486_v23, %v436_v26 }
 0x138   : > { %v487_v27 = vmul.f32 %v485_v25, %v435_v24 }
 0x13a   : > { %794 = vmatprep.mubr.f32.mxu1 %v487_v27 }
 0x13b   : > { %795 = vmatmul.mubr.f32.vlgmr.msra.gmra.mrb[0].mxu1 %v488_v28 }
 0x20c   : > { %589 = sbr.rel (%p721_p12) target bundleno = 541 (0x21d), region = 86 }
 0x20e   : > { %v796_v31 = vpop.f32.mrb[0].mxu1 }
 0x20f   : > { %v583_v32 = vadd.f32 %v796_v31, %v490_v29  ;;  %v573_v33 = vpop.f32.mrb[1].mxu1 }
 0x210   : > { %v582_v34 = vadd.f32 %v573_v33, %v489_v30 }
 0x211   : > { %585 = vst.msk [vmem:[#allocation2 + $0x8] sm:$0xff] %vm353_vm1, %v583_v32 }
 0x212   : > { %584 = vst.msk [vmem:[#allocation2] sm:$0xff] %vm353_vm1, %v582_v34 }
 0x218   : > { %v591_v37 = vld [vmem:[#allocation2 + $0x8] sm:$0xff] }
 0x219   : > { %v590_v35 = vld [vmem:[#allocation2] sm:$0xff]  ;;  %v600_v39 = vadd.f32 %v722_v36, %v591_v37 }
 0x21a   : > { %v599_v38 = vadd.f32 %v722_v36, %v590_v35 }
 0x21b   : > { %602 = vst.msk [vmem:[#allocation4 + $0x8] sm:$0xff] %vm353_vm1, %v600_v39 }
 0x21c   : > { %601 = vst.msk [vmem:[#allocation4] sm:$0xff] %vm353_vm1, %v599_v38 }
 0x21d PF: > { %p1102_p13 = scmp.eq.s32.totalorder %s707_s23, 1  ;;  %s968_s20 = smov [#allocation4]  }
 0x21e   : > { %s612_s13 = sshll.u32 %s968_s20, 4  ;;  %s613_s13 = int_to_ptr.vmem [resolvable:$true] %s612_s13 }
 0x21f   : > { %s896_s14 = scalar_lea.vmem %s613_s13, 256  ;;  %p903_p3 = scmp.lt.s32.totalorder %s613_s13, %s613_s13 }
 0x220   : > { %p897_p0 = scmp.ne.s32.totalorder %s613_s13, %s896_s14  ;;  %p904_p4 = scmp.lt.s32.totalorder %s896_s14, %s896_s14 }
 0x222   : > { %p898_p1 = pnand %p897_p0, %p1102_p13  ;;  %p905_p5 = por %p904_p4, %p903_p3 }
 0x224   : > { %p899_p2 = pneg %p898_p1 }
 0x226   : > { %p906_p6 = pnand %p905_p5, %p899_p2 }
 0x228   : > { %909 = shalt.err (!%p906_p6)
}
 0x229   : > { %s910_s23 = scalar_lea.hbm %s1148_s5, 256 }
 0x22a   : > { %p911_p7 = scmp.ne.s32.totalorder %s1148_s5, %s910_s23  ;;  %p916_p10 = scmp.lt.u32.totalorder %s910_s23, %s1148_s5 }
 0x22c   : > { %p912_p8 = pnand %p911_p7, %p1102_p13 }
 0x22e   : > { %p913_p9 = pneg %p912_p8 }
 0x230   : > { %p918_p11 = pnand %p916_p10, %p913_p9 }
 0x232   : > { %921 = shalt.err (!%p918_p11)
}
 0x233   : > { %s969_s29 = smov 128   ;;  %s970_s18 = smov 8  }
 0x234   : > { %838 = dma.vmem_to_hbm [thread:$0]  (%p1102_p13), %s613_s13, 256, %s1148_s5, [#allocation5], %s969_s29, %s969_s29, %s970_s18  }
 0x235   : > { %943 = dma.done.wait (%p1102_p13), [#allocation5], 256  }
 0x236   : > { %945 = vsyncadd (%p1102_p13), [#allocation5], 4294967040 }
 0x237 PF: > { %s16_s22 = sadd.s32 1, %s964_s22   ;;  %s1150_s18 = smov %s952_s19 }
 0x238   : > { %p13_p12 = scmp.ge.s32.totalorder %s16_s22, 4   ;;  %s1151_s19 = smov %s1037_s27 }
 0x239   : > { %s1152_s20 = smov %s960_s21  ;;  %s1153_s21 = smov %s1155_s24 }
 0x23a   :  { %15 = sbr.rel (!%p13_p12) target bundleno = 3 (0x3), region = 128 }
 0x241   :  { %628 = vsyncpa [#allocation5], 1 }
 0x242   :  { %630 = vsyncpa [#allocation5 + $0x1], 1 }

</bundles_post_ra>
